<compile_context>
chip_gen: v7x
topology: tpu7x:2x2x1
jax: 0.10.0
libtpu: 0.0.40
codegen_flags: <defaults>
</compile_context>

<pallas_src>
import functools

import numpy as np
import jax
import jax.numpy as jnp
from jax.experimental import pallas as pl
from jax.experimental.pallas import tpu as pltpu

PROBE_LINEAR = 0          # Probe.LINEAR.value
SIGMA = 0.2
MIN_PHASORS, MAX_PHASORS = 5, 15   # torch.randint(min, max) -> [min, max)
AXIAL_RES = 100           # min_axial_res == max_axial_res == 100 -> deterministic
LATERAL_RES = 100         # min_lateral_res == max_lateral_res == 100
PAD = 128                 # sample grid padded to an MXU/lane friendly 128x128


def _speckle_kernel(sig_ref, img_ref, noise_ref, ay_ref, axt_ref, out_ref):
    """Fused speckle-noise + separable grid_sample kernel (one output row tile per step).

    sig_ref   : (1,)          f32 SMEM  sigma * sqrt(m)   (m = phasor count, drawn per call)
    img_ref   : (PAD, PAD)    f32 VMEM  gathered mean-intensity samples (padding is don't-care)
    noise_ref : (2, PAD, PAD) f32 VMEM  unit-normal real/imag phasor noise
    ay_ref    : (TH, PAD)     f32 VMEM  row (axial) bilinear interp matrix tile
    axt_ref   : (PAD, W_PAD)  f32 VMEM  column (lateral) interp matrix, transposed + lane padded
    out_ref   : (TH, W_PAD)   f32 VMEM  lane-dense output row tile (channels broadcast outside)
    """
    sig = sig_ref[0]
    nr = sig * noise_ref[0]
    ni = sig * noise_ref[1]

    # amp = sqrt(img) + (nr + j*ni) ;  s = |amp|^2   (all f32: EUP sqrt + VPU FMA)
    re = jnp.sqrt(img_ref[...]) + nr
    s = re * re + ni * ni                                                    # (PAD, PAD)

    # Separable bilinear grid_sample (align_corners=False, padding_mode='zeros') as two MXU
    # matmuls per row tile: out = A_y[tile] @ S @ A_x^T.  f32 operands / f32 accumulation.
    tmp = jnp.dot(ay_ref[...], s, preferred_element_type=jnp.float32)        # (TH, PAD)
    out = jnp.dot(tmp, axt_ref[...], preferred_element_type=jnp.float32)     # (TH, W_PAD)

    out_ref[...] = jnp.clip(out, 0.0, 255.0)   # lane-dense, unmasked store


@functools.lru_cache(maxsize=None)
def _interp_matrices(h, w):
    """Trace-time NumPy constants: 1-D bilinear interp matrices matching
    torch.nn.functional.grid_sample (align_corners=False, padding_mode='zeros')."""

    def interp(out_size, in_size, n_cols):
        coords = np.linspace(-1.0, 1.0, out_size)
        pix = ((coords + 1.0) * in_size - 1.0) / 2.0        # align_corners=False mapping
        i0 = np.floor(pix)
        i1 = i0 + 1.0
        w1 = pix - i0
        w0 = 1.0 - w1
        a = np.zeros((out_size, n_cols), np.float32)
        rows = np.arange(out_size)
        v0 = (i0 >= 0) & (i0 < in_size)
        v1 = (i1 >= 0) & (i1 < in_size)
        a[rows[v0], i0[v0].astype(np.int64)] += w0[v0].astype(np.float32)
        a[rows[v1], i1[v1].astype(np.int64)] += w1[v1].astype(np.float32)
        return a

    w_pad = -(-w // 128) * 128                              # lane-dense output width
    a_y = interp(h, AXIAL_RES, PAD)                         # (h, PAD)
    a_x = interp(w, LATERAL_RES, PAD)                       # (w, PAD)
    a_xt = np.zeros((PAD, w_pad), np.float32)
    a_xt[:, :w] = a_x.T                                     # (PAD, W_PAD), zero lane padding
    return a_y, a_xt, w_pad


@functools.partial(jax.jit, static_argnames=("sigma",))
def _speckle_linear(image, keypoints, rng, *, sigma=SIGMA):
    """Jitted LINEAR-probe speckle pipeline. Returns the augmented (c, h, w) image."""
    c, h, w = image.shape
    x1, y1 = keypoints[0], keypoints[1]
    x2 = keypoints[2]
    y3 = keypoints[5]

    # Step 1/2: sample the mean-intensity image inside the beam ROI.  Index grid is separable
    # (rows depend only on y, cols only on x).  Gather FIRST, then mean over channels: only
    # c*(128*w + 128*128) values are touched instead of the whole c*h*w image.
    y_idx = jnp.clip(jnp.linspace(y1, y3, AXIAL_RES), 0, h - 1).astype(jnp.int32)
    x_idx = jnp.clip(jnp.linspace(x1, x2, LATERAL_RES), 0, w - 1).astype(jnp.int32)
    # Pad the index vectors to PAD; padded rows/cols get zero interpolation weight.
    y_idx = jnp.concatenate([y_idx, jnp.zeros((PAD - AXIAL_RES,), jnp.int32)])
    x_idx = jnp.concatenate([x_idx, jnp.zeros((PAD - LATERAL_RES,), jnp.int32)])
    rows = jnp.take(image.astype(jnp.float32), y_idx, axis=1)        # (c, PAD, w)
    img_p = jnp.mean(jnp.take(rows, x_idx, axis=2), axis=0)          # (PAD, PAD)

    # Step 3: phasor count m drawn per call (torch.randint semantics, [min, max)); the sum of
    # m i.i.d. complex circular Gaussians == one draw with std sigma*sqrt(m).  Unit normals are
    # generated here (single jax.random.normal call) and scaled inside the kernel.
    k_m, k_noise = jax.random.split(rng)
    m = jax.random.randint(k_m, (), MIN_PHASORS, MAX_PHASORS)
    sigma_eff = (sigma * jnp.sqrt(m.astype(jnp.float32))).reshape(1)
    noise = jax.random.normal(k_noise, (2, PAD, PAD), jnp.float32)

    # Step 4: LINEAR-probe grid_sample flow field is separable; interp matrices depend only on
    # static (h, w, res, PAD) -> NumPy constants, baked into the jitted executable.
    a_y_np, a_xt_np, w_pad = _interp_matrices(h, w)
    a_y = jnp.asarray(a_y_np)
    a_xt = jnp.asarray(a_xt_np)

    # Row-tile grid: bounded VMEM for large h and 2-TC sharding on v7x.  Small h -> single block.
    TH = h if h <= 256 else 256
    grid = (pl.cdiv(h, TH),)

    smem = pl.BlockSpec(memory_space=pltpu.MemorySpace.SMEM)
    out_p = pl.pallas_call(
        _speckle_kernel,
        out_shape=jax.ShapeDtypeStruct((h, w_pad), jnp.float32),
        grid=grid,
        in_specs=[
            smem,                                                   # sigma_eff (whole array)
            pl.BlockSpec((PAD, PAD), lambda i: (0, 0)),             # img, grid-invariant
            pl.BlockSpec((2, PAD, PAD), lambda i: (0, 0, 0)),       # noise, grid-invariant
            pl.BlockSpec((TH, PAD), lambda i: (i, 0)),              # a_y row tile
            pl.BlockSpec((PAD, w_pad), lambda i: (0, 0)),           # a_x^T, grid-invariant
        ],
        out_specs=pl.BlockSpec((TH, w_pad), lambda i: (i, 0)),
        compiler_params=pltpu.CompilerParams(
            dimension_semantics=("parallel",)),
    )(sigma_eff, img_p, noise, a_y, a_xt)

    # Kernel emits a single lane-padded plane; slice off the padding and broadcast the channel
    # dim (all channels are identical, exactly as in the torch reference).
    # TODO(synk): if the downstream consumer accepts a single (h, w) plane, defer this
    # broadcast to save (c-1)*h*w*4 bytes of HBM writeback.
    return jnp.broadcast_to(out_p[:, :w][None, :, :], (c, h, w))


def speckle_noise_forward(image, label, keypoints, mask, probe, *, rng, sigma=SIGMA):
    """Mirrors SpeckleNoise.forward for the LINEAR probe branch (square_roi=False)."""
    if int(probe) != PROBE_LINEAR:
        # TODO(synk): convex-probe branch (point-of-intersection / polar warp) and the
        # square_roi tvf.resize path are not implemented.
        raise NotImplementedError("only the LINEAR probe branch is implemented")
    new_image = _speckle_linear(image, keypoints, rng, sigma=sigma)
    return new_image, label, keypoints, mask, probe


if __name__ == "__main__":
    key = jax.random.PRNGKey(0)
    k_img, k_noise = jax.random.split(key)

    c, h, w = 4, 16, 16
    image = jax.random.uniform(k_img, (c, h, w), jnp.float32, 0.0, 255.0)
    label = jnp.int32(1)
    # keypoints: [x1, y1, x2, y2, x3, y3, x4, y4] of the beam region
    keypoints = jnp.array([1.0, 1.0, 14.0, 1.0, 14.0, 14.0, 1.0, 14.0], jnp.float32)
    mask = jnp.ones((1, h, w), jnp.float32)
    probe = jnp.int32(PROBE_LINEAR)

    new_image, label_o, kps_o, mask_o, probe_o = speckle_noise_forward(
        image, label, keypoints, mask, probe, rng=k_noise)
    jax.block_until_ready(new_image)

    assert new_image.shape == (c, h, w) and new_image.dtype == jnp.float32
    assert bool(jnp.all((new_image >= 0.0) & (new_image <= 255.0)))
    assert bool(jnp.all(jnp.isfinite(new_image)))
    print("KERNEL_OK")
</pallas_src>

<mosaic_0001>
module attributes {stable_mosaic.version = 11 : i64} {
  func.func @_speckle_kernel(%arg0: i32, %arg1: memref<1xf32, #tpu.memory_space<smem>>, %arg2: memref<128x128xf32, #tpu.memory_space<vmem>>, %arg3: memref<2x128x128xf32, #tpu.memory_space<vmem>>, %arg4: memref<16x128xf32, #tpu.memory_space<vmem>>, %arg5: memref<128x128xf32, #tpu.memory_space<vmem>>, %arg6: memref<16x128xf32, #tpu.memory_space<vmem>>) attributes {dimension_semantics = [#tpu.dimension_semantics<parallel>], iteration_bounds = array<i64: 1>, scalar_prefetch = 0 : i64, scratch_operands = 0 : i64, tpu.core_type = #tpu.core_type<tc>, window_params = [{transform_indices = @transform_0, window_bounds = array<i64: 1>}, {pipeline_mode = #tpu.pipeline_mode<synchronous>, transform_indices = @transform_1, window_bounds = array<i64: 128, 128>}, {pipeline_mode = #tpu.pipeline_mode<synchronous>, transform_indices = @transform_2, window_bounds = array<i64: 2, 128, 128>}, {transform_indices = @transform_3, window_bounds = array<i64: 16, 128>}, {pipeline_mode = #tpu.pipeline_mode<synchronous>, transform_indices = @transform_4, window_bounds = array<i64: 128, 128>}, {transform_indices = @transform_5, window_bounds = array<i64: 16, 128>}]} {
    %c0 = arith.constant 0 : index
    %0 = memref.load %arg1[%c0] : memref<1xf32, #tpu.memory_space<smem>>
    %c0_0 = arith.constant 0 : index
    %c0_1 = arith.constant 0 : index
    %c0_2 = arith.constant 0 : index
    %1 = vector.load %arg3[%c0_0, %c0_1, %c0_2] : memref<2x128x128xf32, #tpu.memory_space<vmem>>, vector<1x128x128xf32>
    %2 = vector.shape_cast %1 : vector<1x128x128xf32> to vector<128x128xf32>
    %3 = vector.broadcast %0 : f32 to vector<128x128xf32>
    %4 = arith.mulf %3, %2 : vector<128x128xf32>
    %c1 = arith.constant 1 : index
    %c0_3 = arith.constant 0 : index
    %c0_4 = arith.constant 0 : index
    %5 = vector.load %arg3[%c1, %c0_3, %c0_4] : memref<2x128x128xf32, #tpu.memory_space<vmem>>, vector<1x128x128xf32>
    %6 = vector.shape_cast %5 : vector<1x128x128xf32> to vector<128x128xf32>
    %7 = vector.broadcast %0 : f32 to vector<128x128xf32>
    %8 = arith.mulf %7, %6 : vector<128x128xf32>
    %c0_5 = arith.constant 0 : index
    %c0_6 = arith.constant 0 : index
    %9 = vector.load %arg2[%c0_5, %c0_6] : memref<128x128xf32, #tpu.memory_space<vmem>>, vector<128x128xf32>
    %10 = math.sqrt %9 : vector<128x128xf32>
    %11 = arith.addf %10, %4 : vector<128x128xf32>
    %12 = arith.mulf %11, %11 : vector<128x128xf32>
    %13 = arith.mulf %8, %8 : vector<128x128xf32>
    %14 = arith.addf %12, %13 : vector<128x128xf32>
    %c0_7 = arith.constant 0 : index
    %c0_8 = arith.constant 0 : index
    %15 = vector.load %arg4[%c0_7, %c0_8] : memref<16x128xf32, #tpu.memory_space<vmem>>, vector<16x128xf32>
    %cst = arith.constant dense<0.000000e+00> : vector<16x128xf32>
    %16 = tpu.matmul %15, %14, %cst {dimension_numbers = #tpu.dot_dimension_numbers<[1], [0], [0], [1], [0, 0, 1, 1], [], []>} : vector<16x128xf32>, vector<128x128xf32>, vector<16x128xf32> -> vector<16x128xf32>
    %c0_9 = arith.constant 0 : index
    %c0_10 = arith.constant 0 : index
    %17 = vector.load %arg5[%c0_9, %c0_10] : memref<128x128xf32, #tpu.memory_space<vmem>>, vector<128x128xf32>
    %cst_11 = arith.constant dense<0.000000e+00> : vector<16x128xf32>
    %18 = tpu.matmul %16, %17, %cst_11 {dimension_numbers = #tpu.dot_dimension_numbers<[1], [0], [0], [1], [0, 0, 1, 1], [], []>} : vector<16x128xf32>, vector<128x128xf32>, vector<16x128xf32> -> vector<16x128xf32>
    %cst_12 = arith.constant 0.000000e+00 : f32
    %cst_13 = arith.constant 2.550000e+02 : f32
    %19 = vector.broadcast %cst_12 : f32 to vector<16x128xf32>
    %20 = arith.maximumf %19, %18 : vector<16x128xf32>
    %21 = vector.broadcast %cst_13 : f32 to vector<16x128xf32>
    %22 = arith.minimumf %21, %20 : vector<16x128xf32>
    %c0_14 = arith.constant 0 : index
    %c0_15 = arith.constant 0 : index
    %23 = vector.load %arg6[%c0_14, %c0_15] : memref<16x128xf32, #tpu.memory_space<vmem>>, vector<16x128xf32>
    tpu.vector_store %arg6[%c0_14, %c0_15], %22 {strides = array<i32>} : memref<16x128xf32, #tpu.memory_space<vmem>>, vector<16x128xf32>,
    return
  }
  func.func @transform_0(%arg0: i32) -> i32 {
    %c0_i32 = arith.constant 0 : i32
    %c0_i32_0 = arith.constant 0 : i32
    return %c0_i32 : i32
  }
  func.func @transform_1(%arg0: i32) -> (i32, i32) {
    %c0_i32 = arith.constant 0 : i32
    %c0_i32_0 = arith.constant 0 : i32
    %c0_i32_1 = arith.constant 0 : i32
    return %c0_i32, %c0_i32_0 : i32, i32
  }
  func.func @transform_2(%arg0: i32) -> (i32, i32, i32) {
    %c0_i32 = arith.constant 0 : i32
    %c0_i32_0 = arith.constant 0 : i32
    %c0_i32_1 = arith.constant 0 : i32
    %c0_i32_2 = arith.constant 0 : i32
    return %c0_i32, %c0_i32_0, %c0_i32_1 : i32, i32, i32
  }
  func.func @transform_3(%arg0: i32) -> (i32, i32) {
    %c0_i32 = arith.constant 0 : i32
    %c0_i32_0 = arith.constant 0 : i32
    return %arg0, %c0_i32 : i32, i32
  }
  func.func @transform_4(%arg0: i32) -> (i32, i32) {
    %c0_i32 = arith.constant 0 : i32
    %c0_i32_0 = arith.constant 0 : i32
    %c0_i32_1 = arith.constant 0 : i32
    return %c0_i32, %c0_i32_0 : i32, i32
  }
  func.func @transform_5(%arg0: i32) -> (i32, i32) {
    %c0_i32 = arith.constant 0 : i32
    %c0_i32_0 = arith.constant 0 : i32
    return %arg0, %c0_i32 : i32, i32
  }
}

</mosaic_0001>

<bundles_post_ra>
// kernel: _speckle_linear.1
= control target key start
LH: loop header
LB: loop body
LE: loop exit
PB: predicated region body
PF: predicated region fallthrough
CT: control target
= control target key end

     0   :  { %s1203_s0 = inlined_call_operand.<no memory space> [shape: f32[1], index: 0, kind: input, shape index: {}]   ;;  %s1204_s1 = inlined_call_operand.vmem [shape: f32[128,128], index: 1, kind: input, shape index: {}]   ;;  %s1205_s2 = inlined_call_operand.vmem [shape: f32[2,128,128], index: 2, kind: input, shape index: {}]   ;;  %s1206_s3 = inlined_call_operand.vmem [shape: f32[16,128], index: 3, kind: input, shape index: {}]   ;;  %s1207_s4 = inlined_call_operand.vmem [shape: f32[128,128], index: 4, kind: input, shape index: {}]   ;;  %s1208_s5 = inlined_call_operand.vmem [shape: f32[16,128], index: 5, kind: output, shape index: {}]  }
   0x1   :  { %v22_v0 = vld [vmem:[%s1205_s2] sm:$0xff]  ;;  %v23_v1 = vld [vmem:[%s1205_s2 + $0x8] sm:$0xff]  ;;  %v718_v3 = vstv %s1203_s0  ;;  %v460_v9 = vld [vmem:[%s1205_s2 + $0x90] sm:$0xff] }
   0x2   :  { %v458_v2 = vld [vmem:[%s1205_s2 + $0x80] sm:$0xff]  ;;  %v459_v4 = vld [vmem:[%s1205_s2 + $0x88] sm:$0xff]  ;;  %v743_v10 = vld [vmem:[%s1204_s1 + $0x10] sm:$0xff]  ;;  %v751_v12 = vmul.f32 %v718_v3, %v22_v0  ;;  %v754_v13 = vmul.f32 %v718_v3, %v23_v1  ;;  %v74_v19 = vmul.f32 %v460_v9, %v718_v3 }
   0x3   :  { %v726_v5 = vld [vmem:[%s1204_s1] sm:$0xff]  ;;  %v731_v6 = vld [vmem:[%s1204_s1 + $0x8] sm:$0xff]  ;;  %v72_v7 = vmul.f32 %v458_v2, %v718_v3  ;;  %v73_v8 = vmul.f32 %v459_v4, %v718_v3  ;;  %v748_v11 = vld [vmem:[%s1204_s1 + $0x18] sm:$0xff]  ;;  %vm120_vm4 = vcmp.eq.f32.partialorder %v743_v10, inf  ;;  %vm122_vm5 = vcmp.eq.f32.partialorder %v743_v10, 0.0 }
   0x4   :  { %644 = vrsqrt.f32 %v726_v5  ;;  %vm106_vm0 = vcmp.eq.f32.partialorder %v726_v5, inf  ;;  %v24_v14 = vld [vmem:[%s1205_s2 + $0x10] sm:$0xff]  ;;  %v461_v15 = vld [vmem:[%s1205_s2 + $0x98] sm:$0xff]  ;;  %vm108_vm1 = vcmp.eq.f32.partialorder %v726_v5, 0.0  ;;  %v109_v16 = vand.u32 2147483648, %v726_v5  ;;  %v462_v20 = vld [vmem:[%s1205_s2 + $0xa0] sm:$0xff] }
   0x5   :  { %646 = vrsqrt.f32 %v731_v6  ;;  %vm113_vm2 = vcmp.eq.f32.partialorder %v731_v6, inf  ;;  %v25_v17 = vld [vmem:[%s1205_s2 + $0x18] sm:$0xff]  ;;  %vm115_vm3 = vcmp.eq.f32.partialorder %v731_v6, 0.0  ;;  %v116_v18 = vand.u32 2147483648, %v731_v6  ;;  %v780_v21 = vld [vmem:[%s1204_s1 + $0x20] sm:$0xff]  ;;  %v463_v26 = vld [vmem:[%s1205_s2 + $0xa8] sm:$0xff] }
   0x6   :  { %648 = vrsqrt.f32 %v743_v10  ;;  %v782_v22 = vmul.f32 %v72_v7, %v72_v7  ;;  %v784_v23 = vmul.f32 %v73_v8, %v73_v8  ;;  %v787_v24 = vmul.f32 %v718_v3, %v24_v14  ;;  %v796_v27 = vld [vmem:[%s1204_s1 + $0x28] sm:$0xff]  ;;  %v26_v30 = vld [vmem:[%s1205_s2 + $0x20] sm:$0xff]  ;;  %v817_v33 = vld [vmem:[%s1204_s1 + $0x30] sm:$0xff] }
   0x7   :  { %650 = vrsqrt.f32 %v748_v11  ;;  %v75_v25 = vmul.f32 %v461_v15, %v718_v3  ;;  %v799_v28 = vmul.f32 %v718_v3, %v25_v17  ;;  %v123_v29 = vand.u32 2147483648, %v743_v10  ;;  %v27_v31 = vld [vmem:[%s1205_s2 + $0x28] sm:$0xff]  ;;  %v28_v40 = vld [vmem:[%s1205_s2 + $0x30] sm:$0xff]  ;;  %v839_v41 = vld [vmem:[%s1204_s1 + $0x38] sm:$0xff] }
   0x8   :  { %vm127_vm6 = vcmp.eq.f32.partialorder %v748_v11, inf  ;;  %vm129_vm7 = vcmp.eq.f32.partialorder %v748_v11, 0.0  ;;  %v76_v32 = vmul.f32 %v462_v20, %v718_v3  ;;  %652 = vrsqrt.f32 %v780_v21  ;;  %v29_v44 = vld [vmem:[%s1205_s2 + $0x38] sm:$0xff]  ;;  %v464_v45 = vld [vmem:[%s1205_s2 + $0xb0] sm:$0xff]  ;;  %v886_v63 = vld [vmem:[%s1204_s1 + $0x40] sm:$0xff] }
   0x9   :  { %v130_v34 = vand.u32 2147483648, %v748_v11  ;;  %v820_v35 = vmul.f32 %v74_v19, %v74_v19  ;;  %v77_v36 = vmul.f32 %v463_v26, %v718_v3  ;;  %654 = vrsqrt.f32 %v796_v27  ;;  %v465_v46 = vld [vmem:[%s1205_s2 + $0xb8] sm:$0xff]  ;;  %v280_v0 = vld [vmem:[%s1206_s3] sm:$0xff] }
   0xa   :  { %v824_v37 = vmul.f32 %v75_v25, %v75_v25  ;;  %v827_v38 = vmul.f32 %v718_v3, %v26_v30  ;;  %v830_v39 = vmul.f32 %v718_v3, %v27_v31  ;;  %vm134_vm8 = vcmp.eq.f32.partialorder %v780_v21, inf  ;;  %542 = vmatprep.mubr.f32.mxu0 %v280_v0  ;;  %v31_v0 = vld [vmem:[%s1205_s2 + $0x48] sm:$0xff] }
   0xb   :  { %vm136_vm9 = vcmp.eq.f32.partialorder %v780_v21, 0.0  ;;  %v137_v43 = vand.u32 2147483648, %v780_v21  ;;  %vm141_vm10 = vcmp.eq.f32.partialorder %v796_v27, inf  ;;  %656 = vrsqrt.f32 %v817_v33 }
   0xc   :  { %vm143_vm11 = vcmp.eq.f32.partialorder %v796_v27, 0.0  ;;  %v144_v49 = vand.u32 2147483648, %v796_v27  ;;  %v857_v50 = vmul.f32 %v76_v32, %v76_v32  ;;  %v860_v52 = vmul.f32 %v77_v36, %v77_v36 }
   0xd   :  { %v863_v53 = vmul.f32 %v718_v3, %v28_v40  ;;  %658 = vrsqrt.f32 %v839_v41  ;;  %v870_v56 = vmul.f32 %v718_v3, %v29_v44  ;;  %v78_v57 = vmul.f32 %v464_v45, %v718_v3 }
   0xe   :  { %v645_v42 = vpop.eup %644  ;;  %v874_v58 = vmul.f32 %v465_v46, %v718_v3  ;;  %vm148_vm12 = vcmp.eq.f32.partialorder %v817_v33, inf  ;;  %vm150_vm13 = vcmp.eq.f32.partialorder %v817_v33, 0.0  ;;  %v151_v8 = vand.u32 2147483648, %v817_v33 }
   0xf   :  { %v647_v47 = vpop.eup %646  ;;  %v105_v48 = vmul.f32 %v645_v42, %v726_v5  ;;  %vm155_vm14 = vcmp.eq.f32.partialorder %v839_v41, inf  ;;  %660 = vrsqrt.f32 %v886_v63  ;;  %vm157_vm15 = vcmp.eq.f32.partialorder %v839_v41, 0.0 }
  0x10   :  { %v112_v51 = vmul.f32 %v647_v47, %v731_v6  ;;  %v649_v54 = vpop.eup %648  ;;  %v254_v47 = vmul.f32 %v78_v57, %v78_v57 }
  0x11   :  { %v107_v55 = vsel %vm106_vm0, %v726_v5, %v105_v48  ;;  %v651_v59 = vpop.eup %650  ;;  %v119_v62 = vmul.f32 %v649_v54, %v743_v10  ;;  %v30_v48 = vld [vmem:[%s1205_s2 + $0x40] sm:$0xff]  ;;  %vm162_vm0 = vcmp.eq.f32.partialorder %v886_v63, inf }
  0x12   :  { %v110_v60 = vsel %vm108_vm1, %v109_v16, %v107_v55  ;;  %v114_v61 = vsel %vm113_vm2, %v731_v6, %v112_v51  ;;  %v126_v4 = vmul.f32 %v651_v59, %v748_v11  ;;  %v653_v9 = vpop.eup %652  ;;  %v255_v51 = vmul.f32 %v874_v58, %v874_v58  ;;  %v466_v59 = vld [vmem:[%s1205_s2 + $0xc0] sm:$0xff]  ;;  %v972_v58 = vld [vmem:[%s1204_s1 + $0x50] sm:$0xff] }
  0x13   :  { %v117_v1 = vsel %vm115_vm3, %v116_v18, %v114_v61  ;;  %v216_v2 = vadd.f32 %v110_v60, %v751_v12  ;;  %v121_v7 = vsel %vm120_vm4, %v743_v10, %v119_v62  ;;  %v133_v18 = vmul.f32 %v653_v9, %v780_v21  ;;  %v468_v9 = vld [vmem:[%s1205_s2 + $0xd0] sm:$0xff] }
  0x14   :  { %v217_v5 = vadd.f32 %v117_v1, %v754_v13  ;;  %v124_v12 = vsel %vm122_vm5, %v123_v29, %v121_v7  ;;  %v128_v14 = vsel %vm127_vm6, %v748_v11, %v126_v4  ;;  %v655_v13 = vpop.eup %654  ;;  %vm164_vm1 = vcmp.eq.f32.partialorder %v886_v63, 0.0  ;;  %v983_v1 = vld [vmem:[%s1204_s1 + $0x58] sm:$0xff] }
  0x15   :  { %v232_v6 = vmul.f32 %v216_v2, %v216_v2  ;;  %v131_v16 = vsel %vm129_vm7, %v130_v34, %v128_v14  ;;  %v218_v17 = vadd.f32 %v124_v12, %v787_v24  ;;  %v140_v20 = vmul.f32 %v655_v13, %v796_v27  ;;  %v657_v25 = vpop.eup %656  ;;  %v33_v13 = vld [vmem:[%s1205_s2 + $0x58] sm:$0xff] }
  0x16   :  { %v233_v15 = vmul.f32 %v217_v5, %v217_v5  ;;  %v219_v10 = vadd.f32 %v131_v16, %v799_v28  ;;  %v135_v11 = vsel %vm134_vm8, %v780_v21, %v133_v18  ;;  %v158_v24 = vand.u32 2147483648, %v839_v41 }
  0x17   :  { %v264_v19 = vadd.f32 %v782_v22, %v232_v6  ;;  %v234_v29 = vmul.f32 %v218_v17, %v218_v17  ;;  %v138_v22 = vsel %vm136_vm9, %v137_v43, %v135_v11  ;;  %v142_v28 = vsel %vm141_vm10, %v796_v27, %v140_v20  ;;  %v659_v32 = vpop.eup %658  ;;  %v469_v6 = vld [vmem:[%s1205_s2 + $0xd8] sm:$0xff] }
  0x18   :  { %v265_v26 = vadd.f32 %v784_v23, %v233_v15  ;;  %v235_v30 = vmul.f32 %v219_v10, %v219_v10  ;;  %v147_v31 = vmul.f32 %v657_v25, %v817_v33  ;;  %v932_v23 = vld [vmem:[%s1204_s1 + $0x48] sm:$0xff]  ;;  %v145_v40 = vsel %vm143_vm11, %v144_v49, %v142_v28  ;;  %v1008_v15 = vld [vmem:[%s1204_s1 + $0x60] sm:$0xff] }
  0x19   :  { %v266_v36 = vadd.f32 %v820_v35, %v234_v29  ;;  %v220_v21 = vadd.f32 %v138_v22, %v827_v38  ;;  %v221_v43 = vadd.f32 %v145_v40, %v830_v39  ;;  %v154_v45 = vmul.f32 %v659_v32, %v839_v41  ;;  %v661_v54 = vpop.eup %660  ;;  %v34_v28 = vld [vmem:[%s1205_s2 + $0x60] sm:$0xff]  ;;  %v1050_v40 = vld [vmem:[%s1204_s1 + $0x70] sm:$0xff] }
  0x1a   :  { %v580_v34 = vpack.c.bf16 %v265_v26, %v264_v19  ;;  %v267_v42 = vadd.f32 %v824_v37, %v235_v30  ;;  %v149_v44 = vsel %vm148_vm12, %v817_v33, %v147_v31  ;;  %662 = vrsqrt.f32 %v932_v23  ;;  %v1018_v26 = vld [vmem:[%s1204_s1 + $0x68] sm:$0xff]  ;;  %v470_v32 = vld [vmem:[%s1205_s2 + $0xe0] sm:$0xff] }
  0x1b   :  { %v236_v46 = vmul.f32 %v220_v21, %v220_v21  ;;  %v152_v35 = vsel %vm150_vm13, %v151_v8, %v149_v44  ;;  %v237_v38 = vmul.f32 %v221_v43, %v221_v43  ;;  %v156_v37 = vsel %vm155_vm14, %v839_v41, %v154_v45  ;;  %v467_v41 = vld [vmem:[%s1205_s2 + $0xc8] sm:$0xff]  ;;  %v1062_v45 = vld [vmem:[%s1204_s1 + $0x78] sm:$0xff] }
  0x1c   :  { %581 = vmatprep.subr.bf16.mxu0 %v580_v34  ;;  %v584_v27 = vpack.c.bf16 %v267_v42, %v266_v36  ;;  %v222_v39 = vadd.f32 %v152_v35, %v863_v53  ;;  %v159_v33 = vsel %vm157_vm15, %v158_v24, %v156_v37  ;;  %v80_v2 = vmul.f32 %v466_v59, %v718_v3  ;;  %v35_v31 = vld [vmem:[%s1205_s2 + $0x68] sm:$0xff]  ;;  %v36_v59 = vld [vmem:[%s1205_s2 + $0x70] sm:$0xff] }
  0x1d   :  { %583 = vmatpush3.bf16.msra.mxu0 %v580_v34  ;;  %v268_v49 = vadd.f32 %v857_v50, %v236_v46  ;;  %v269_v55 = vadd.f32 %v860_v52, %v237_v38  ;;  %v223_v53 = vadd.f32 %v159_v33, %v870_v56  ;;  %v165_v50 = vand.u32 2147483648, %v886_v63  ;;  %v471_v36 = vld [vmem:[%s1205_s2 + $0xe8] sm:$0xff] }
  0x1e   :  { %585 = vmatprep.subr.bf16.mxu0 %v584_v27  ;;  %v238_v57 = vmul.f32 %v222_v39, %v222_v39  ;;  %v47_v52 = vmul.f32 %v718_v3, %v30_v48  ;;  %v161_v56 = vmul.f32 %v661_v54, %v886_v63  ;;  %v81_v4 = vmul.f32 %v467_v41, %v718_v3  ;;  %v357_v39 = vld [vmem:[%s1207_s4] sm:$0xff]  ;;  %v358_v33 = vld [vmem:[%s1207_s4 + $0x8] sm:$0xff]  ;;  %v360_v54 = vld [vmem:[%s1207_s4 + $0x18] sm:$0xff] }
  0x1f   :  { %v588_v60 = vpack.c.bf16 %v269_v55, %v268_v49  ;;  %v239_v61 = vmul.f32 %v223_v53, %v223_v53  ;;  %664 = vrsqrt.f32 %v972_v58  ;;  %v48_v12 = vmul.f32 %v718_v3, %v31_v0 }
  0x20   :  { %v270_v62 = vadd.f32 %v254_v47, %v238_v57  ;;  %v163_v5 = vsel %vm162_vm0, %v886_v63, %v161_v56  ;;  %v32_v63 = vld [vmem:[%s1205_s2 + $0x50] sm:$0xff]  ;;  %666 = vrsqrt.f32 %v983_v1  ;;  %vm169_vm2 = vcmp.eq.f32.partialorder %v932_v23, inf }
  0x21   :  { %587 = vmatpush3.bf16.msra.mxu0 %v584_v27  ;;  %v271_v7 = vadd.f32 %v255_v51, %v239_v61  ;;  %v166_v8 = vsel %vm164_vm1, %v165_v50, %v163_v5  ;;  %vm171_vm3 = vcmp.eq.f32.partialorder %v932_v23, 0.0  ;;  %v172_v17 = vand.u32 2147483648, %v932_v23  ;;  %v359_v51 = vld [vmem:[%s1207_s4 + $0x10] sm:$0xff] }
  0x22   :  { %589 = vmatprep.subr.bf16.mxu0 %v588_v60  ;;  %v224_v14 = vadd.f32 %v166_v8, %v47_v52  ;;  %v256_v19 = vmul.f32 %v80_v2, %v80_v2  ;;  %v257_v10 = vmul.f32 %v81_v4, %v81_v4  ;;  %v82_v20 = vmul.f32 %v468_v9, %v718_v3  ;;  %v472_v61 = vld [vmem:[%s1205_s2 + $0xf0] sm:$0xff]  ;;  %v473_v2 = vld [vmem:[%s1205_s2 + $0xf8] sm:$0xff] }
  0x23   :  { %v592_v16 = vpack.c.bf16 %v271_v7, %v270_v62  ;;  %v83_v25 = vmul.f32 %v469_v6, %v718_v3  ;;  %v49_v11 = vmul.f32 %v718_v3, %v32_v63  ;;  %v1023_v24 = vmul.f32 %v718_v3, %v33_v13 }
  0x24   :  { %v663_v18 = vpop.eup %662  ;;  %668 = vrsqrt.f32 %v1008_v15  ;;  %v240_v30 = vmul.f32 %v224_v14, %v224_v14  ;;  %vm176_vm4 = vcmp.eq.f32.partialorder %v972_v58, inf  ;;  %vm178_vm5 = vcmp.eq.f32.partialorder %v972_v58, 0.0  ;;  %v362_v14 = vld [vmem:[%s1207_s4 + $0x28] sm:$0xff] }
  0x25   :  { %591 = vmatpush3.bf16.msra.mxu0 %v588_v60  ;;  %v168_v29 = vmul.f32 %v663_v18, %v932_v23  ;;  %v179_v22 = vand.u32 2147483648, %v972_v58  ;;  %vm183_vm6 = vcmp.eq.f32.partialorder %v983_v1, inf  ;;  %vm185_vm7 = vcmp.eq.f32.partialorder %v983_v1, 0.0  ;;  %v37_v60 = vld [vmem:[%s1205_s2 + $0x78] sm:$0xff] }
  0x26   :  { %593 = vmatprep.subr.bf16.mxu0 %v592_v16  ;;  %670 = vrsqrt.f32 %v1018_v26  ;;  %v186_v42 = vand.u32 2147483648, %v983_v1  ;;  %v1055_v43 = vmul.f32 %v82_v20, %v82_v20  ;;  %v1057_v44 = vmul.f32 %v83_v25, %v83_v25 }
  0x27   :  { %v170_v34 = vsel %vm169_vm2, %v932_v23, %v168_v29  ;;  %v1065_v35 = vmul.f32 %v718_v3, %v34_v28  ;;  %v1068_v47 = vmul.f32 %v718_v3, %v35_v31  ;;  %v84_v23 = vmul.f32 %v470_v32, %v718_v3  ;;  %v364_v28 = vld [vmem:[%s1207_s4 + $0x38] sm:$0xff] }
  0x28   :  { %v173_v21 = vsel %vm171_vm3, %v172_v17, %v170_v34  ;;  %v272_v38 = vadd.f32 %v256_v19, %v240_v30  ;;  %v85_v37 = vmul.f32 %v471_v36, %v718_v3  ;;  %vm190_vm8 = vcmp.eq.f32.partialorder %v1008_v15, inf }
  0x29   :  { %595 = vmatpush3.bf16.msra.mxu0 %v592_v16  ;;  %v225_v46 = vadd.f32 %v173_v21, %v48_v12  ;;  %v665_v27 = vpop.eup %664  ;;  %672 = vrsqrt.f32 %v1050_v40  ;;  %vm192_vm9 = vcmp.eq.f32.partialorder %v1008_v15, 0.0  ;;  %v193_v53 = vand.u32 2147483648, %v1008_v15 }
  0x2a   :  { %v175_v49 = vmul.f32 %v665_v27, %v972_v58  ;;  %674 = vrsqrt.f32 %v1062_v45  ;;  %v667_v55 = vpop.eup %666  ;;  %vm197_vm10 = vcmp.eq.f32.partialorder %v1018_v26, inf  ;;  %vm199_vm11 = vcmp.eq.f32.partialorder %v1018_v26, 0.0 }
  0x2b   :  { %v241_v48 = vmul.f32 %v225_v46, %v225_v46  ;;  %v200_v57 = vand.u32 2147483648, %v1018_v26  ;;  %v182_v52 = vmul.f32 %v667_v55, %v983_v1  ;;  %v260_v56 = vmul.f32 %v84_v23, %v84_v23 }
  0x2c   :  { %v177_v50 = vsel %vm176_vm4, %v972_v58, %v175_v49  ;;  %v1108_v0 = vmul.f32 %v85_v37, %v85_v37  ;;  %v612_v4 = vpack.c.bf16 %v358_v33, %v357_v39  ;;  %v616_v5 = vpack.c.bf16 %v360_v54, %v359_v51  ;;  %v361_v58 = vld [vmem:[%s1207_s4 + $0x20] sm:$0xff]  ;;  %v366_v39 = vld [vmem:[%s1207_s4 + $0x48] sm:$0xff] }
  0x2d   :  { %v273_v41 = vadd.f32 %v257_v10, %v241_v48  ;;  %v180_v62 = vsel %vm178_vm5, %v179_v22, %v177_v50  ;;  %v184_v9 = vsel %vm183_vm6, %v983_v1, %v182_v52  ;;  %v53_v12 = vmul.f32 %v718_v3, %v36_v59  ;;  %v363_v22 = vld [vmem:[%s1207_s4 + $0x30] sm:$0xff]  ;;  %v368_v50 = vld [vmem:[%s1207_s4 + $0x58] sm:$0xff] }
  0x2e   :  { %v669_v7 = vpop.eup %668  ;;  %v226_v6 = vadd.f32 %v180_v62, %v49_v11  ;;  %v187_v63 = vsel %vm185_vm7, %v186_v42, %v184_v9  ;;  %v54_v16 = vmul.f32 %v718_v3, %v37_v60  ;;  %v86_v17 = vmul.f32 %v472_v61, %v718_v3  ;;  %613 = vmatprep.subr.bf16.mxu1 %v612_v4  ;;  %v369_v62 = vld [vmem:[%s1207_s4 + $0x60] sm:$0xff] }
  0x2f   :  { %v596_v8 = vpack.c.bf16 %v273_v41, %v272_v38  ;;  %v189_v13 = vmul.f32 %v669_v7, %v1008_v15  ;;  %v227_v19 = vadd.f32 %v187_v63, %v1023_v24  ;;  %v87_v20 = vmul.f32 %v473_v2, %v718_v3  ;;  %615 = vmatpush3.bf16.msra.mxu1 %v612_v4  ;;  %v371_v7 = vld [vmem:[%s1207_s4 + $0x70] sm:$0xff] }
  0x30   :  { %v671_v18 = vpop.eup %670  ;;  %v242_v10 = vmul.f32 %v226_v6, %v226_v6  ;;  %vm204_vm12 = vcmp.eq.f32.partialorder %v1050_v40, inf  ;;  %vm206_vm13 = vcmp.eq.f32.partialorder %v1050_v40, 0.0  ;;  %617 = vmatprep.subr.bf16.mxu1 %v616_v5  ;;  %v620_v29 = vpack.c.bf16 %v362_v14, %v361_v58 }
  0x31   :  { %597 = vmatprep.subr.bf16.mxu0 %v596_v8  ;;  %v191_v1 = vsel %vm190_vm8, %v1008_v15, %v189_v13  ;;  %v196_v25 = vmul.f32 %v671_v18, %v1018_v26  ;;  %v243_v11 = vmul.f32 %v227_v19, %v227_v19  ;;  %v207_v30 = vand.u32 2147483648, %v1050_v40 }
  0x32   :  { %599 = vmatpush3.bf16.msra.mxu0 %v596_v8  ;;  %v274_v24 = vadd.f32 %v1055_v43, %v242_v10  ;;  %v194_v3 = vsel %vm192_vm9, %v193_v53, %v191_v1  ;;  %vm211_vm14 = vcmp.eq.f32.partialorder %v1062_v45, inf  ;;  %vm213_vm15 = vcmp.eq.f32.partialorder %v1062_v45, 0.0  ;;  %v372_v8 = vld [vmem:[%s1207_s4 + $0x78] sm:$0xff] }
  0x33   :  { %v673_v31 = vpop.eup %672  ;;  %v198_v32 = vsel %vm197_vm10, %v1018_v26, %v196_v25  ;;  %v228_v34 = vadd.f32 %v194_v3, %v1065_v35  ;;  %v275_v36 = vadd.f32 %v1057_v44, %v243_v11  ;;  %v214_v43 = vand.u32 2147483648, %v1062_v45  ;;  %619 = vmatpush3.bf16.msra.mxu1 %v616_v5  ;;  %v365_v26 = vld [vmem:[%s1207_s4 + $0x40] sm:$0xff]  ;;  %v281_v5 = vld [vmem:[%s1206_s3 + $0x8] sm:$0xff] }
  0x34   :  { %v675_v15 = vpop.eup %674  ;;  %v201_v21 = vsel %vm199_vm11, %v200_v57, %v198_v32  ;;  %v203_v42 = vmul.f32 %v673_v31, %v1050_v40  ;;  %621 = vmatprep.subr.bf16.mxu1 %v620_v29  ;;  %v624_v27 = vpack.c.bf16 %v364_v28, %v363_v22  ;;  %v262_v37 = vmul.f32 %v86_v17, %v86_v17 }
  0x35   :  { %v229_v46 = vadd.f32 %v201_v21, %v1068_v47  ;;  %v244_v23 = vmul.f32 %v228_v34, %v228_v34  ;;  %v210_v35 = vmul.f32 %v675_v15, %v1062_v45  ;;  %v600_v38 = vpack.c.bf16 %v275_v36, %v274_v24 }
  0x36   :  { %v205_v44 = vsel %vm204_vm12, %v1050_v40, %v203_v42  ;;  %v263_v55 = vmul.f32 %v87_v20, %v87_v20  ;;  %v628_v59 = vpack.c.bf16 %v366_v39, %v365_v26  ;;  %v367_v40 = vld [vmem:[%s1207_s4 + $0x50] sm:$0xff]  ;;  %v640_v9 = vpack.c.bf16 %v372_v8, %v371_v7 }
  0x37   :  { %v245_v47 = vmul.f32 %v229_v46, %v229_v46  ;;  %v276_v48 = vadd.f32 %v260_v56, %v244_v23  ;;  %v208_v49 = vsel %vm206_vm13, %v207_v30, %v205_v44  ;;  %v212_v33 = vsel %vm211_vm14, %v1062_v45, %v210_v35  ;;  %601 = vmatprep.subr.bf16.mxu0 %v600_v38 }
  0x38   :  { %v215_v51 = vsel %vm213_vm15, %v214_v43, %v212_v33  ;;  %v230_v54 = vadd.f32 %v208_v49, %v53_v12  ;;  %623 = vmatpush3.bf16.msra.mxu1 %v620_v29  ;;  %603 = vmatpush3.bf16.msra.mxu0 %v600_v38  ;;  %v632_v61 = vpack.c.bf16 %v368_v50, %v367_v40 }
  0x39   :  { %v277_v53 = vadd.f32 %v1108_v0, %v245_v47  ;;  %v231_v57 = vadd.f32 %v215_v51, %v54_v16  ;;  %625 = vmatprep.subr.bf16.mxu1 %v624_v27  ;;  %v370_v0 = vld [vmem:[%s1207_s4 + $0x68] sm:$0xff] }
  0x3a   :  { %v246_v41 = vmul.f32 %v230_v54, %v230_v54  ;;  %v636_v4 = vpack.c.bf16 %v370_v0, %v369_v62 }
  0x3b   :  { %v604_v45 = vpack.c.bf16 %v277_v53, %v276_v48  ;;  %v247_v52 = vmul.f32 %v231_v57, %v231_v57 }
  0x3c   :  { %v278_v56 = vadd.f32 %v262_v37, %v246_v41  ;;  %627 = vmatpush3.bf16.msra.mxu1 %v624_v27 }
  0x3d   :  { %605 = vmatprep.subr.bf16.mxu0 %v604_v45  ;;  %v279_v60 = vadd.f32 %v263_v55, %v247_v52  ;;  %629 = vmatprep.subr.bf16.mxu1 %v628_v59 }
  0x3e   :  { %607 = vmatpush3.bf16.msra.mxu0 %v604_v45 }
  0x3f   :  { %v608_v2 = vpack.c.bf16 %v279_v60, %v278_v56 }
  0x40   :  { %631 = vmatpush3.bf16.msra.mxu1 %v628_v59 }
  0x41   :  { %609 = vmatprep.subr.bf16.mxu0 %v608_v2  ;;  %633 = vmatprep.subr.bf16.mxu1 %v632_v61 }
  0x42   :  { %611 = vmatpush3.bf16.msra.mxu0 %v608_v2 }
  0x44   :  { %635 = vmatpush3.bf16.msra.mxu1 %v632_v61 }
  0x45   :  { %543 = vmatmul.mubr.f32.vlgmr.msra.gmra.mrb[0].mxu0 %v281_v5  ;;  %637 = vmatprep.subr.bf16.mxu1 %v636_v4 }
  0x48   :  { %639 = vmatpush3.bf16.msra.mxu1 %v636_v4 }
  0x49   :  { %641 = vmatprep.subr.bf16.mxu1 %v640_v9 }
  0x4c   :  { %643 = vmatpush3.bf16.msra.mxu1 %v640_v9 }
 0x118   :  { %v544_v6 = vpop.f32.mrb[0].mxu0 }
 0x119   :  { %v348_v12 = vpop.f32.mrb[1].mxu0 }
 0x11a   :  { %577 = vmatprep.mubr.f32.mxu1 %v348_v12 }
 0x11b   :  { %578 = vmatmul.mubr.f32.vlgmr.msra.gmra.mrb[0].mxu1 %v544_v6 }
 0x1ee   :  { %v579_v58 = vpop.f32.mrb[0].mxu1 }
 0x1ef   :  { %v449_v14 = vmax.f32 %v579_v58, 0.0  ;;  %v439_v63 = vpop.f32.mrb[1].mxu1 }
 0x1f0   :  { %v448_v13 = vmax.f32 %v439_v63, 0.0 }
 0x1f1   :  { %v451_v16 = vmin.f32 %v449_v14, 255.0 }
 0x1f2   :  { %v450_v17 = vmin.f32 %v448_v13, 255.0 }
 0x1f3   :  { %453 = vst [vmem:[%s1208_s5 + $0x8] sm:$0xff] %v451_v16 }
 0x1f4   :  { %452 = vst [vmem:[%s1208_s5] sm:$0xff] %v450_v17 }

</bundles_post_ra>
